<compile_context>
chip_gen: v5e
topology: v5e:2x2
jax: 0.10.0
libtpu: 0.0.40
codegen_flags: <defaults>
</compile_context>

<pallas_src>
import jax
import jax.numpy as jnp
from jax import lax
from jax.experimental import pallas as pl
from jax.experimental.pallas import tpu as pltpu

GAMMA = 0.5               # statically 0.5 -> sqrt inside the kernel
C4 = 10.0
_NFEAT = 34               # rb / gb feature width fixed by the module
_TWO_NFEAT = 2 * _NFEAT   # 68
_LANE = 128
_VMEM_LIMIT = 32 * 1024 * 1024   # scoped VMEM ceiling; safe on v5e/v6e/v7x
_VMEM_BUDGET = 24 * 1024 * 1024  # what we let the double-buffered tiles use


def _make_loss_kernel(tile, tpc, total_rows, need_mask):
    """Build the tiled-reduction kernel (all sizes are static Python ints)."""
    inv_n = 1.0 / float(total_rows * _NFEAT)

    def kernel(rb_hat_ref, gb_hat_ref, tgt_ref, out_ref, acc_ref):
        c = pl.program_id(0)   # core-split axis ("parallel")
        i = pl.program_id(1)   # row-block axis ("arbitrary", carries acc)

        @pl.when(i == 0)
        def _init():
            acc_ref[...] = jnp.zeros_like(acc_ref)

        rb_hat = rb_hat_ref[...].astype(jnp.float32)          # (T, 34)
        gb_hat = gb_hat_ref[...].astype(jnp.float32)          # (T, 34)
        t = tgt_ref[:, 0:_TWO_NFEAT].astype(jnp.float32)      # (T, 68) = [rb | gb]

        # Unified 68-lane frame: lanes [0,34) carry the rb-term, [34,68) the
        # gb-term, so each side needs a single sqrt (EUP work halved vs four
        # 34-lane sqrts) and no narrow-lane slicing of the diff is needed.
        is_g = lax.broadcasted_iota(jnp.int32, t.shape, 1) >= _NFEAT
        u_t = jnp.where(is_g, t, 1.0 - t)                          # [1-rb   | gb    ]
        u_h = jnp.concatenate([1.0 - rb_hat, gb_hat], axis=1)      # [1-rb^  | gb^   ]
        d = jnp.sqrt(u_t) - jnp.sqrt(u_h)                          # [d_r    | d_g   ]
        d2 = d * d
        contrib = d2 + jnp.where(is_g, C4 * (d2 * d2), 0.0)        # (T, 68)

        # Unclamped logical block index (the DMA index_map clamps separately).
        step = c * tpc + i

        if need_mask:
            @pl.when((step + 1) * tile <= total_rows)
            def _acc_full():
                acc_ref[...] += jnp.sum(contrib, axis=0, keepdims=True)

            @pl.when((step + 1) * tile > total_rows)
            def _acc_ragged():
                # Overhanging / phantom rows: select (never multiply) so any
                # NaN/Inf garbage in padded rows is discarded before the sum.
                row = lax.broadcasted_iota(jnp.int32, contrib.shape, 0)
                valid = (step * tile + row) < total_rows
                masked = jnp.where(valid, contrib, 0.0)
                acc_ref[...] += jnp.sum(masked, axis=0, keepdims=True)
        else:
            acc_ref[...] += jnp.sum(contrib, axis=0, keepdims=True)

        @pl.when(i == pl.num_programs(1) - 1)
        def _finalize():
            # Per-core partial, 68 lanes wide; final lane-sum happens in the
            # wrapper (one tiny XLA reduce over (ncore, 1, 68)).
            out_ref[...] = (acc_ref[...] * inv_n)[None]

    return kernel


def custom_loss(outputs, targets, *, tile_rows=4096, num_core_splits=2):
    """Pallas equivalent of CustomLoss.forward(outputs, targets).

    outputs: tuple (rb_hat, gb_hat), each [B, S, 34]
    targets: [B, S, >=68]  (rb = [..., :34], gb = [..., 34:68])
    returns: scalar float32 loss
    """
    rb_hat, gb_hat = outputs[0], outputs[1]
    B, S, D = rb_hat.shape
    assert D == _NFEAT and gb_hat.shape == (B, S, _NFEAT)
    assert targets.shape[0] == B and targets.shape[1] == S
    tgt_feats = targets.shape[2]
    assert tgt_feats >= _TWO_NFEAT

    rows = B * S
    # Only free contiguous reshapes in the wrapper; slicing + f32 cast are
    # in-kernel so there is no extra HBM pass before the kernel.
    rb_hat2 = rb_hat.reshape(rows, _NFEAT)
    gb_hat2 = gb_hat.reshape(rows, _NFEAT)
    tgt2 = targets.reshape(rows, tgt_feats)

    # --- tile selection (amortize the ~0.35us/step cost, stay under VMEM) ---
    itemsize = max(rb_hat2.dtype.itemsize, gb_hat2.dtype.itemsize, tgt2.dtype.itemsize)
    lanes_tgt = pl.cdiv(tgt_feats, _LANE) * _LANE
    bytes_per_row = (2 * _LANE + lanes_tgt) * itemsize      # lane-padded VMEM rows
    max_tile_by_vmem = max(_VMEM_BUDGET // (2 * bytes_per_row), 8)  # double-buffered
    tile = min(int(tile_rows), int(max_tile_by_vmem))
    tile = max((tile // 8) * 8, 8)                          # sublane multiple of 8
    if rows <= tile:
        tile = rows                                          # full-extent block is legal

    num_blocks = pl.cdiv(rows, tile)
    ncore = num_core_splits if num_blocks >= 2 else 1        # v7x: one c per TensorCore
    tpc = pl.cdiv(num_blocks, ncore)                         # row-blocks per core
    need_mask = (ncore * tpc * tile) != rows                 # ragged tail / phantom blocks
    nb_last = num_blocks - 1

    def in_map(c, i):
        # Clamp phantom steps (odd block counts) to a valid block; the kernel
        # masks their rows out using the unclamped logical index.
        return (jnp.minimum(c * tpc + i, nb_last), 0)

    kernel = _make_loss_kernel(tile, tpc, rows, need_mask)

    grid_spec = pltpu.PrefetchScalarGridSpec(
        num_scalar_prefetch=0,
        grid=(ncore, tpc),
        in_specs=[
            pl.BlockSpec((tile, _NFEAT), in_map),
            pl.BlockSpec((tile, _NFEAT), in_map),
            pl.BlockSpec((tile, tgt_feats), in_map),
        ],
        out_specs=pl.BlockSpec((1, 1, _TWO_NFEAT), lambda c, i: (c, 0, 0)),
        scratch_shapes=[pltpu.VMEM((1, _TWO_NFEAT), jnp.float32)],
    )

    partials = pl.pallas_call(
        kernel,
        out_shape=jax.ShapeDtypeStruct((ncore, 1, _TWO_NFEAT), jnp.float32),
        grid_spec=grid_spec,
        compiler_params=pltpu.CompilerParams(
            dimension_semantics=("parallel", "arbitrary"),
            vmem_limit_bytes=_VMEM_LIMIT),
    )(rb_hat2, gb_hat2, tgt2)

    return jnp.sum(partials)


def _reference_loss(outputs, targets):
    """Plain-JAX reference mirroring the PyTorch forward (uses pow, not sqrt)."""
    rb_hat = outputs[0].astype(jnp.float32)
    gb_hat = outputs[1].astype(jnp.float32)
    rb = targets[:, :, :34].astype(jnp.float32)
    gb = targets[:, :, 34:68].astype(jnp.float32)
    d_g = jnp.power(gb, GAMMA) - jnp.power(gb_hat, GAMMA)
    d_r = jnp.power(1.0 - rb, GAMMA) - jnp.power(1.0 - rb_hat, GAMMA)
    return jnp.mean(d_g ** 2) + C4 * jnp.mean(d_g ** 4) + jnp.mean(d_r ** 2)


if __name__ == "__main__":
    key = jax.random.PRNGKey(0)
    keys = jax.random.split(key, 9)

    # --- Test 1: shapes implied by the module, single-tile path -------------
    B, S = 2, 8
    rb_hat = jax.random.uniform(keys[0], (B, S, 34), dtype=jnp.float32)
    gb_hat = jax.random.uniform(keys[1], (B, S, 34), dtype=jnp.float32)
    targets = jax.random.uniform(keys[2], (B, S, 68), dtype=jnp.float32)
    loss = jax.block_until_ready(custom_loss((rb_hat, gb_hat), targets))
    ref = jax.block_until_ready(_reference_loss((rb_hat, gb_hat), targets))
    assert jnp.allclose(loss, ref, rtol=1e-5, atol=1e-5), (loss, ref)

    # --- Test 2: multi-step grid, 2-way core split, ragged last tile --------
    B2, S2 = 2, 13   # rows=26, tile=8 -> 4 row-blocks over a (2,2) grid
    rb_hat2 = jax.random.uniform(keys[3], (B2, S2, 34), dtype=jnp.float32)
    gb_hat2 = jax.random.uniform(keys[4], (B2, S2, 34), dtype=jnp.float32)
    targets2 = jax.random.uniform(keys[5], (B2, S2, 68), dtype=jnp.float32)
    loss2 = jax.block_until_ready(custom_loss((rb_hat2, gb_hat2), targets2, tile_rows=8))
    ref2 = jax.block_until_ready(_reference_loss((rb_hat2, gb_hat2), targets2))
    assert jnp.allclose(loss2, ref2, rtol=1e-5, atol=1e-5), (loss2, ref2)

    # --- Test 3: odd block count (phantom step on core 1) + extra target cols
    B3, S3 = 3, 7    # rows=21, tile=8 -> 3 real blocks on a (2,2) grid
    rb_hat3 = jax.random.uniform(keys[6], (B3, S3, 34), dtype=jnp.float32)
    gb_hat3 = jax.random.uniform(keys[7], (B3, S3, 34), dtype=jnp.float32)
    targets3 = jax.random.uniform(keys[8], (B3, S3, 80), dtype=jnp.float32)
    loss3 = jax.block_until_ready(custom_loss((rb_hat3, gb_hat3), targets3, tile_rows=8))
    ref3 = jax.block_until_ready(_reference_loss((rb_hat3, gb_hat3), targets3))
    assert jnp.allclose(loss3, ref3, rtol=1e-5, atol=1e-5), (loss3, ref3)

    print("KERNEL_OK")
</pallas_src>

<mosaic_0001>
module attributes {stable_mosaic.version = 11 : i64} {
  func.func @kernel(%arg0: i32, %arg1: i32, %arg2: memref<16x34xf32, #tpu.memory_space<vmem>>, %arg3: memref<16x34xf32, #tpu.memory_space<vmem>>, %arg4: memref<16x68xf32, #tpu.memory_space<vmem>>, %arg5: memref<1x1x68xf32, #tpu.memory_space<vmem>>, %arg6: memref<1x68xf32, #tpu.memory_space<vmem>>) attributes {dimension_semantics = [#tpu.dimension_semantics<parallel>, #tpu.dimension_semantics<arbitrary>], iteration_bounds = array<i64: 1, 1>, scalar_prefetch = 0 : i64, scratch_operands = 1 : i64, tpu.core_type = #tpu.core_type<tc>, window_params = [{transform_indices = @transform_0, window_bounds = array<i64: 16, 34>}, {transform_indices = @transform_1, window_bounds = array<i64: 16, 34>}, {transform_indices = @transform_2, window_bounds = array<i64: 16, 68>}, {transform_indices = @transform_3, window_bounds = array<i64: 1, 1, 68>}]} {
    %c0_i32 = arith.constant 0 : i32
    %0 = arith.cmpi eq, %arg1, %c0_i32 : i32
    %1 = arith.extui %0 : i1 to i32
    %c0_i32_0 = arith.constant 0 : i32
    %2 = arith.cmpi ne, %1, %c0_i32_0 : i32
    scf.if %2 {
      %cst_16 = arith.constant 0.000000e+00 : f32
      %33 = vector.broadcast %cst_16 : f32 to vector<1x68xf32>
      %c0_17 = arith.constant 0 : index
      %c0_18 = arith.constant 0 : index
      %34 = vector.load %arg6[%c0_17, %c0_18] : memref<1x68xf32, #tpu.memory_space<vmem>>, vector<1x68xf32>
      tpu.vector_store %arg6[%c0_17, %c0_18], %33 {strides = array<i32>} : memref<1x68xf32, #tpu.memory_space<vmem>>, vector<1x68xf32>,
    } else {
    }
    %c0 = arith.constant 0 : index
    %c0_1 = arith.constant 0 : index
    %3 = vector.load %arg2[%c0, %c0_1] : memref<16x34xf32, #tpu.memory_space<vmem>>, vector<16x34xf32>
    %c0_2 = arith.constant 0 : index
    %c0_3 = arith.constant 0 : index
    %4 = vector.load %arg3[%c0_2, %c0_3] : memref<16x34xf32, #tpu.memory_space<vmem>>, vector<16x34xf32>
    %c0_4 = arith.constant 0 : index
    %c0_5 = arith.constant 0 : index
    %5 = vector.load %arg4[%c0_4, %c0_5] : memref<16x68xf32, #tpu.memory_space<vmem>>, vector<16x68xf32>
    %6 = tpu.iota {dimensions = array<i32: 1>} : vector<16x68xi32>
    %c34_i32 = arith.constant 34 : i32
    %7 = vector.broadcast %c34_i32 : i32 to vector<16x68xi32>
    %8 = arith.cmpi sge, %6, %7 : vector<16x68xi32>
    %cst = arith.constant 1.000000e+00 : f32
    %9 = vector.broadcast %cst : f32 to vector<16x68xf32>
    %10 = arith.subf %9, %5 : vector<16x68xf32>
    %11 = arith.select %8, %5, %10 : vector<16x68xi1>, vector<16x68xf32>
    %cst_6 = arith.constant 1.000000e+00 : f32
    %12 = vector.broadcast %cst_6 : f32 to vector<16x34xf32>
    %13 = arith.subf %12, %3 : vector<16x34xf32>
    %14 = tpu.concatenate %13, %4 in 1 : vector<16x34xf32>, vector<16x34xf32> -> vector<16x68xf32>
    %15 = math.sqrt %11 : vector<16x68xf32>
    %16 = math.sqrt %14 : vector<16x68xf32>
    %17 = arith.subf %15, %16 : vector<16x68xf32>
    %18 = arith.mulf %17, %17 : vector<16x68xf32>
    %19 = arith.mulf %18, %18 : vector<16x68xf32>
    %cst_7 = arith.constant 1.000000e+01 : f32
    %20 = vector.broadcast %cst_7 : f32 to vector<16x68xf32>
    %21 = arith.mulf %20, %19 : vector<16x68xf32>
    %cst_8 = arith.constant 0.000000e+00 : f32
    %22 = vector.broadcast %cst_8 : f32 to vector<16x68xf32>
    %23 = arith.select %8, %21, %22 : vector<16x68xi1>, vector<16x68xf32>
    %24 = arith.addf %18, %23 : vector<16x68xf32>
    %c0_9 = arith.constant 0 : index
    %c0_10 = arith.constant 0 : index
    %25 = vector.load %arg6[%c0_9, %c0_10] : memref<1x68xf32, #tpu.memory_space<vmem>>, vector<1x68xf32>
    %cst_11 = arith.constant dense<0.000000e+00> : vector<68xf32>
    %26 = vector.multi_reduction <add>, %24, %cst_11 [0] : vector<16x68xf32> to vector<68xf32>
    %27 = vector.shape_cast %26 : vector<68xf32> to vector<1x68xf32>
    %28 = arith.addf %25, %27 : vector<1x68xf32>
    %c0_12 = arith.constant 0 : index
    %c0_13 = arith.constant 0 : index
    %29 = vector.load %arg6[%c0_12, %c0_13] : memref<1x68xf32, #tpu.memory_space<vmem>>, vector<1x68xf32>
    tpu.vector_store %arg6[%c0_12, %c0_13], %28 {strides = array<i32>} : memref<1x68xf32, #tpu.memory_space<vmem>>, vector<1x68xf32>,
    %c0_i32_14 = arith.constant 0 : i32
    %30 = arith.cmpi eq, %arg1, %c0_i32_14 : i32
    %31 = arith.extui %30 : i1 to i32
    %c0_i32_15 = arith.constant 0 : i32
    %32 = arith.cmpi ne, %31, %c0_i32_15 : i32
    scf.if %32 {
      %c0_16 = arith.constant 0 : index
      %c0_17 = arith.constant 0 : index
      %33 = vector.load %arg6[%c0_16, %c0_17] : memref<1x68xf32, #tpu.memory_space<vmem>>, vector<1x68xf32>
      %cst_18 = arith.constant 0.0018382353 : f32
      %34 = vector.broadcast %cst_18 : f32 to vector<1x68xf32>
      %35 = arith.mulf %33, %34 : vector<1x68xf32>
      %36 = vector.shape_cast %35 : vector<1x68xf32> to vector<1x1x68xf32>
      %c0_19 = arith.constant 0 : index
      %c0_20 = arith.constant 0 : index
      %c0_21 = arith.constant 0 : index
      %37 = vector.load %arg5[%c0_19, %c0_20, %c0_21] : memref<1x1x68xf32, #tpu.memory_space<vmem>>, vector<1x1x68xf32>
      tpu.vector_store %arg5[%c0_19, %c0_20, %c0_21], %36 {strides = array<i32>} : memref<1x1x68xf32, #tpu.memory_space<vmem>>, vector<1x1x68xf32>,
    } else {
    }
    return
  }
  func.func @transform_0(%arg0: i32, %arg1: i32) -> (i32, i32) {
    %c1_i32 = arith.constant 1 : i32
    %0 = arith.muli %arg0, %c1_i32 : i32
    %1 = arith.addi %0, %arg1 : i32
    %c0_i32 = arith.constant 0 : i32
    %2 = arith.minsi %1, %c0_i32 : i32
    %c0_i32_0 = arith.constant 0 : i32
    %c0_i32_1 = arith.constant 0 : i32
    return %2, %c0_i32_0 : i32, i32
  }
  func.func @transform_1(%arg0: i32, %arg1: i32) -> (i32, i32) {
    %c1_i32 = arith.constant 1 : i32
    %0 = arith.muli %arg0, %c1_i32 : i32
    %1 = arith.addi %0, %arg1 : i32
    %c0_i32 = arith.constant 0 : i32
    %2 = arith.minsi %1, %c0_i32 : i32
    %c0_i32_0 = arith.constant 0 : i32
    %c0_i32_1 = arith.constant 0 : i32
    return %2, %c0_i32_0 : i32, i32
  }
  func.func @transform_2(%arg0: i32, %arg1: i32) -> (i32, i32) {
    %c1_i32 = arith.constant 1 : i32
    %0 = arith.muli %arg0, %c1_i32 : i32
    %1 = arith.addi %0, %arg1 : i32
    %c0_i32 = arith.constant 0 : i32
    %2 = arith.minsi %1, %c0_i32 : i32
    %c0_i32_0 = arith.constant 0 : i32
    %c0_i32_1 = arith.constant 0 : i32
    return %2, %c0_i32_0 : i32, i32
  }
  func.func @transform_3(%arg0: i32, %arg1: i32) -> (i32, i32, i32) {
    %c0_i32 = arith.constant 0 : i32
    %c0_i32_0 = arith.constant 0 : i32
    %c0_i32_1 = arith.constant 0 : i32
    return %arg0, %c0_i32, %c0_i32_0 : i32, i32, i32
  }
}

</mosaic_0001>

<bundles_post_ra>
// kernel: tpu_custom_call.1
= control target key start
LH: loop header
LB: loop body
LE: loop exit
PB: predicated region body
PF: predicated region fallthrough
CT: control target
= control target key end

     0   :  { %8 = vsyncpa [#allocation4], 0  ;;  %s409_s0 = inlined_call_operand.hbm [shape: f32[16,34], index: 0, kind: input, shape index: {}]   ;;  %s410_s1 = inlined_call_operand.hbm [shape: f32[16,34], index: 1, kind: input, shape index: {}]   ;;  %s411_s2 = inlined_call_operand.hbm [shape: f32[16,68], index: 2, kind: input, shape index: {}]   ;;  %s412_s3 = inlined_call_operand.hbm [shape: f32[1,1,68], index: 3, kind: output, shape index: {}]  }
   0x1   :  { %9 = vsyncpa [#allocation7], 0 }
   0x2   :  { %10 = vsyncpa [#allocation5], 0  ;;  %s40_s14 = sshll.u32 %s410_s1, 4  ;;  %s346_s15 = smov [#allocation6]   ;;  %s41_s14 = int_to_ptr.hbm [resolvable:$true] %s40_s14 }
   0x3   :  { %s42_s16 = sshll.u32 %s346_s15, 4  ;;  %s21_s19 = sshll.u32 %s409_s0, 4  ;;  %s43_s16 = int_to_ptr.vmem [resolvable:$true] %s42_s16  ;;  %s22_s19 = int_to_ptr.hbm [resolvable:$true] %s21_s19 }
   0x4   :  { %s347_s20 = smov 128   ;;  %s348_s21 = smov 8  }
   0x5   :  { %48 = dma.hbm_to_vmem [thread:$0]  %s41_s14, 256, %s43_s16, [#allocation7], %s347_s20, %s347_s20, %s348_s21  }
   0x6   :  { %s349_s22 = smov [#allocation3]   ;;  %s59_s26 = sshll.u32 %s411_s2, 4  ;;  %s60_s26 = int_to_ptr.hbm [resolvable:$true] %s59_s26 }
   0x7   :  { %s23_s23 = sshll.u32 %s349_s22, 4  ;;  %s350_s1 = smov [#allocation8]   ;;  %s24_s23 = int_to_ptr.vmem [resolvable:$true] %s23_s23 }
   0x8   :  { %29 = dma.hbm_to_vmem [thread:$0]  %s22_s19, 256, %s24_s23, [#allocation4], %s347_s20, %s347_s20, %s348_s21  }
   0x9   :  { %s61_s27 = sshll.u32 %s350_s1, 4  ;;  %s62_s27 = int_to_ptr.vmem [resolvable:$true] %s61_s27 }
   0xa   :  { %67 = dma.hbm_to_vmem [thread:$0]  %s60_s26, 256, %s62_s27, [#allocation7], %s347_s20, %s347_s20, %s348_s21  }
   0xb   :  { %340 = dma.done.wait [#allocation4], 256  }
   0xc   :  { %341 = vsyncadd [#allocation4], 4294967040 }
   0xd   :  { %342 = dma.done.wait [#allocation7], 512  }
   0xe   :  { %343 = vsyncadd [#allocation7], 4294966784  ;;  %v100_v0 = vld [vmem:[#allocation6] sm:$0xff]  ;;  %s351_s0 = smov 34   ;;  %v101_v1 = vld [vmem:[#allocation6 + $0x8] sm:$0xff]  ;;  %v104_v2 = vlaneseq  ;;  %vm121_vm1 = vcmask 277504  }
   0xf   :  { %115 = vrot.lane.b32.xlu0 %v100_v0, %s351_s0  ;;  %v102_v3 = vld [vmem:[#allocation8] sm:$0xff]  ;;  %v103_v7 = vld [vmem:[#allocation8 + $0x8] sm:$0xff]  ;;  %vm96_vm3 = vcmask 548864   ;;  %v352_v37 = vmov 0.0   ;;  %vm185_vm11 = vcmask 556032   ;;  %s353_s2 = smov [#allocation9]  }
  0x10   :  { %v383_v4 = vand.u32 127, %v104_v2  ;;  %v107_v5 = vsub.f32 1.0, %v102_v3  ;;  %v108_v8 = vsub.f32 1.0, %v103_v7  ;;  %v98_v12 = vld [vmem:[#allocation3] sm:$0xff]  ;;  %v99_v20 = vld [vmem:[#allocation3 + $0x8] sm:$0xff]  ;;  %s209_s28 = sshll.u32 %s353_s2, 4  ;;  %s210_s28 = int_to_ptr.vmem [resolvable:$true] %s209_s28 }
  0x11   :  { %v111_v14 = vsub.f32 1.0, %v98_v12  ;;  %v112_v23 = vsub.f32 1.0, %v99_v20  ;;  %97 = vst.msk [vmem:[#allocation2] sm:$0x1] %vm96_vm3, %v352_v37  ;;  %s211_s4 = sshll.u32 %s412_s3, 4  ;;  %s212_s4 = int_to_ptr.hbm [resolvable:$true] %s211_s4 }
  0x12   :  { %vm106_vm0 = vcmp.ge.s32.totalorder %v383_v4, 34 }
  0x13   :  { %v109_v6 = vsel %vm106_vm0, %v102_v3, %v107_v5  ;;  %v390_v9 = vsel %vm106_vm0, %v103_v7, %v108_v8 }
  0x14   :  { %236 = vrsqrt.f32 %v109_v6  ;;  %vm131_vm2 = vcmp.eq.f32.partialorder %v109_v6, inf  ;;  %vm133_vm4 = vcmp.eq.f32.partialorder %v109_v6, 0.0  ;;  %v134_v36 = vand.u32 2147483648, %v109_v6 }
  0x15   :  { %238 = vrsqrt.f32 %v390_v9  ;;  %vm143_vm7 = vcmp.eq.f32.partialorder %v390_v9, inf  ;;  %v146_v52 = vand.u32 2147483648, %v390_v9  ;;  %vm145_vm8 = vcmp.eq.f32.partialorder %v390_v9, 0.0 }
  0x17   :  { %117 = vrot.lane.b32.xlu0 %v101_v1, %s351_s0 }
  0x1a   :  { %v237_v10 = vpop.eup %236 }
  0x1b   :  { %v125_v11 = vmul.f32 %v237_v10, %v109_v6  ;;  %v239_v15 = vpop.eup %238 }
  0x1c   :  { %v137_v19 = vmul.f32 %v239_v15, %v390_v9 }
  0x1d   :  { %v126_v13 = vmul.f32 %v237_v10, %v125_v11 }
  0x1e   :  { %v138_v22 = vmul.f32 %v239_v15, %v137_v19 }
  0x1f   :  { %v127_v17 = vmul.f32 0.5, %v126_v13 }
  0x20   :  { %v139_v28 = vmul.f32 0.5, %v138_v22 }
  0x21   :  { %v128_v21 = vsub.f32 1.5, %v127_v17 }
  0x22   :  { %v140_v33 = vsub.f32 1.5, %v139_v28 }
  0x23   :  { %v129_v26 = vmul.f32 %v237_v10, %v128_v21 }
  0x24   :  { %v141_v40 = vmul.f32 %v239_v15, %v140_v33 }
  0x25   :  { %v130_v31 = vmul.f32 %v129_v26, %v109_v6 }
  0x26   :  { %v142_v47 = vmul.f32 %v141_v40, %v390_v9 }
  0x27   :  { %v132_v38 = vsel %vm131_vm2, %v109_v6, %v130_v31 }
  0x28   :  { %v135_v44 = vsel %vm133_vm4, %v134_v36, %v132_v38  ;;  %v144_v54 = vsel %vm143_vm7, %v390_v9, %v142_v47 }
  0x29   :  { %v147_v58 = vsel %vm145_vm8, %v146_v52, %v144_v54 }
  0x81   :  { %v116_v16 = vpop.permute.xlu0 %115 }
  0x82   :  { %v122_v18 = vsel %vm121_vm1, %v111_v14, %v116_v16  ;;  %v184_v16 = vld [vmem:[#allocation2] sm:$0x1] }
  0x83   :  { %240 = vrsqrt.f32 %v122_v18  ;;  %vm155_vm5 = vcmp.eq.f32.partialorder %v122_v18, inf  ;;  %v158_v45 = vand.u32 2147483648, %v122_v18  ;;  %vm157_vm6 = vcmp.eq.f32.partialorder %v122_v18, 0.0 }
  0x89   :  { %v241_v24 = vpop.eup %240  ;;  %v118_v25 = vpop.permute.xlu0 %117 }
  0x8a   :  { %v149_v27 = vmul.f32 %v241_v24, %v122_v18  ;;  %v123_v29 = vsel %vm121_vm1, %v112_v23, %v118_v25 }
  0x8b   :  { %242 = vrsqrt.f32 %v123_v29  ;;  %vm167_vm9 = vcmp.eq.f32.partialorder %v123_v29, inf  ;;  %v170_v59 = vand.u32 2147483648, %v123_v29  ;;  %vm169_vm10 = vcmp.eq.f32.partialorder %v123_v29, 0.0 }
  0x8c   :  { %v150_v30 = vmul.f32 %v241_v24, %v149_v27 }
  0x8e   :  { %v151_v32 = vmul.f32 0.5, %v150_v30 }
  0x90   :  { %v152_v34 = vsub.f32 1.5, %v151_v32 }
  0x91   :  { %v243_v35 = vpop.eup %242 }
  0x92   :  { %v153_v39 = vmul.f32 %v241_v24, %v152_v34  ;;  %v161_v41 = vmul.f32 %v243_v35, %v123_v29 }
  0x94   :  { %v154_v42 = vmul.f32 %v153_v39, %v122_v18  ;;  %v162_v43 = vmul.f32 %v243_v35, %v161_v41 }
  0x96   :  { %v156_v46 = vsel %vm155_vm5, %v122_v18, %v154_v42  ;;  %v163_v48 = vmul.f32 0.5, %v162_v43 }
  0x97   :  { %v159_v49 = vsel %vm157_vm6, %v158_v45, %v156_v46 }
  0x98   :  { %v172_v50 = vsub.f32 %v135_v44, %v159_v49  ;;  %v164_v51 = vsub.f32 1.5, %v163_v48 }
  0x9a   :  { %v174_v53 = vmul.f32 %v172_v50, %v172_v50  ;;  %v165_v55 = vmul.f32 %v243_v35, %v164_v51 }
  0x9c   :  { %v176_v56 = vmul.f32 %v174_v53, %v174_v53  ;;  %v166_v57 = vmul.f32 %v165_v55, %v123_v29 }
  0x9e   :  { %v168_v60 = vsel %vm167_vm9, %v123_v29, %v166_v57  ;;  %v178_v62 = vmul.f32 10.0, %v176_v56 }
  0x9f   :  { %v171_v61 = vsel %vm169_vm10, %v170_v59, %v168_v60 }
  0xa0   :  { %v173_v63 = vsub.f32 %v147_v58, %v171_v61  ;;  %v180_v1 = vsel %vm106_vm0, %v178_v62, 0.0 }
  0xa1   :  { %v182_v5 = vadd.f32 %v180_v1, %v174_v53 }
  0xa2   :  { %v175_v0 = vmul.f32 %v173_v63, %v173_v63 }
  0xa3   :  { %v186_v8 = vsel %vm185_vm11, %v182_v5, 0.0 }
  0xa4   :  { %v177_v2 = vmul.f32 %v175_v0, %v175_v0 }
  0xa6   :  { %v179_v3 = vmul.f32 10.0, %v177_v2 }
  0xa8   :  { %v181_v6 = vsel %vm106_vm0, %v179_v3, 0.0 }
  0xa9   :  { %v183_v7 = vadd.f32 %v181_v6, %v175_v0 }
  0xab   :  { %v187_v9 = vsel %vm185_vm11, %v183_v7, 0.0 }
  0xac   :  { %v188_v10 = vadd.f32 %v187_v9, %v186_v8 }
  0xae   :  { %v189_v11 = vrot.slane %v188_v10, 4 }
  0xb0   :  { %v190_v12 = vadd.f32 %v189_v11, %v188_v10 }
  0xb2   :  { %v191_v13 = vrot.slane %v190_v12, 2 }
  0xb4   :  { %v192_v14 = vadd.f32 %v191_v13, %v190_v12 }
  0xb6   :  { %v193_v15 = vrot.slane %v192_v14, 1 }
  0xb8   :  { %v194_v17 = vadd.f32 %v193_v15, %v192_v14 }
  0xba   :  { %v195_v18 = vadd.f32 %v194_v17, %v184_v16 }
  0xbc   :  { %197 = vst.msk [vmem:[#allocation2] sm:$0x1] %vm96_vm3, %v195_v18 }
  0xc3   :  { %v201_v4 = vld [vmem:[#allocation2] sm:$0x1] }
  0xc4   :  { %v202_v19 = vmul.f32 0.0018382353, %v201_v4 }
  0xc6   :  { %203 = vst.msk [vmem:[#allocation9] sm:$0x1] %vm96_vm3, %v202_v19 }
  0xc7   :  { %214 = dma.vmem_to_hbm [thread:$0]  %s210_s28, 16, %s212_s4, [#allocation5]  }
  0xc8   :  { %344 = dma.done.wait [#allocation5], 16  }
  0xc9   :  { %345 = vsyncadd [#allocation5], 4294967280 }
  0xca   :  { %219 = vsyncpa [#allocation4], 1 }
  0xcb   :  { %220 = vsyncpa [#allocation7], 1 }
  0xcc   :  { %221 = vsyncpa [#allocation5], 1 }

</bundles_post_ra>
